<compile_context>
chip_gen: v7x
topology: tpu7x:2x2x1
jax: 0.10.0
libtpu: 0.0.40
codegen_flags: <defaults>
</compile_context>

<pallas_src>
import jax
import jax.numpy as jnp
from jax.experimental import pallas as pl
from jax.experimental.pallas import tpu as pltpu


def mlp_kernel(x_ref, w1_ref, b1_ref, w2_ref, b2_ref,
               w3_ref, b3_ref, w4_ref, b4_ref, o_ref):
    # x_ref: (D, tb) f32 -> cast to bf16 in-kernel (review item: fold the cast in)
    xb = x_ref[...].astype(jnp.bfloat16)

    # layer1 + ReLU : (128, D) @ (D, tb) -> (128, tb), f32 accumulate
    h = jnp.dot(w1_ref[...], xb, preferred_element_type=jnp.float32)
    h = jnp.maximum(h + b1_ref[...], 0.0)

    # layer2 + ReLU : (64, 128) @ (128, tb) -> (64, tb)
    h = jnp.dot(w2_ref[...], h.astype(jnp.bfloat16),
                preferred_element_type=jnp.float32)
    h = jnp.maximum(h + b2_ref[...], 0.0)

    # layer3 + Tanh : (32, 64) @ (64, tb) -> (32, tb)
    h = jnp.dot(w3_ref[...], h.astype(jnp.bfloat16),
                preferred_element_type=jnp.float32)
    h = jnp.tanh(h + b3_ref[...])

    # layer4 + Sigmoid : width-1 output -> VPU multiply + sublane reduce (XLU),
    # producing a lane-dense (1, tb) row (no masked 1-of-128-lane stores).
    logit = jnp.sum(h * w4_ref[...], axis=0, keepdims=True) + b4_ref[...]
    o_ref[...] = jax.nn.sigmoid(logit)


def _round_up(n, m):
    return ((n + m - 1) // m) * m


def classification_nn_forward(x, params, *, tile_b=2048):
    """x: (B, input_size) float32.

    params (native PyTorch layout):
      W1 (128, D), b1 (128,), W2 (64, 128), b2 (64,),
      W3 (32, 64), b3 (32,), W4 (1, 32),  b4 (1,)
    Returns (B, 1) float32 sigmoid outputs.
    """
    w1, b1, w2, b2, w3, b3, w4, b4 = params
    B, D = x.shape

    # ---- batch tile selection: lane-dense tiles (multiples of 128), and at
    # least 2 grid steps when the batch is big enough (DMA pipelining + both
    # TensorCores on v7x). -------------------------------------------------
    tile_b = max(128, _round_up(tile_b, 128))
    if B <= 256:
        tb = _round_up(B, 128)
    else:
        tb = min(tile_b, _round_up((B + 1) // 2, 128))
    b_pad = _round_up(B, tb)
    grid = (b_pad // tb,)

    # ---- layout plumbing (cheap: x is only (B, 16) f32) --------------------
    x_t = x.T                                   # (D, B) f32; bf16 cast happens in-kernel
    if b_pad != B:
        x_t = jnp.pad(x_t, ((0, 0), (0, b_pad - B)))   # padded cols sliced off below

    w1b = w1.astype(jnp.bfloat16)               # (128, D)
    w2b = w2.astype(jnp.bfloat16)               # (64, 128)
    w3b = w3.astype(jnp.bfloat16)               # (32, 64)
    b1c = b1.reshape(-1, 1).astype(jnp.float32)  # (128, 1)
    b2c = b2.reshape(-1, 1).astype(jnp.float32)  # (64, 1)
    b3c = b3.reshape(-1, 1).astype(jnp.float32)  # (32, 1)
    w4c = w4.reshape(-1, 1).astype(jnp.float32)  # (32, 1)  VPU path, keep f32
    b4c = b4.reshape(1, 1).astype(jnp.float32)   # (1, 1)

    def resident(arr):
        # Same block every grid step -> fetched once, stays VMEM-resident.
        return pl.BlockSpec(arr.shape, lambda i: (0,) * arr.ndim)

    out = pl.pallas_call(
        mlp_kernel,
        out_shape=jax.ShapeDtypeStruct((1, b_pad), jnp.float32),
        grid=grid,
        in_specs=[pl.BlockSpec((D, tb), lambda i: (0, i)),
                  resident(w1b), resident(b1c),
                  resident(w2b), resident(b2c),
                  resident(w3b), resident(b3c),
                  resident(w4c), resident(b4c)],
        out_specs=pl.BlockSpec((1, tb), lambda i: (0, i)),
        compiler_params=pltpu.CompilerParams(
            dimension_semantics=("parallel",)),
    )(x_t, w1b, b1c, w2b, b2c, w3b, b3c, w4c, b4c)

    return out[0, :B].reshape(B, 1)


def init_params(key, input_size):
    """Deterministic synthetic init matching nn.Linear's uniform bound.
    Weights in native PyTorch layout: (out_features, in_features); bias (out,)."""
    sizes = [(input_size, 128), (128, 64), (64, 32), (32, 1)]
    params = []
    for fan_in, fan_out in sizes:
        kw, kb, key = jax.random.split(key, 3)
        bound = 1.0 / jnp.sqrt(fan_in)
        w = jax.random.uniform(kw, (fan_out, fan_in), jnp.float32, -bound, bound)
        b = jax.random.uniform(kb, (fan_out,), jnp.float32, -bound, bound)
        params += [w, b]
    return tuple(params)


def _reference(x, params):
    w1, b1, w2, b2, w3, b3, w4, b4 = params
    h = jnp.maximum(x @ w1.T + b1, 0.0)
    h = jnp.maximum(h @ w2.T + b2, 0.0)
    h = jnp.tanh(h @ w3.T + b3)
    return jax.nn.sigmoid(h @ w4.T + b4)


if __name__ == "__main__":
    key = jax.random.PRNGKey(0)
    kx, kp = jax.random.split(key)

    batch = 1000          # exercises 2 grid tiles + ragged-tail padding
    input_size = 16
    x = jax.random.normal(kx, (batch, input_size), jnp.float32)
    params = init_params(kp, input_size)

    out = classification_nn_forward(x, params)
    out = jax.block_until_ready(out)

    # sanity: shape (B, 1), sigmoid range, and agreement with a plain-JAX f32
    # reference (loose tolerance: x / weights hit the MXU as bf16).
    assert out.shape == (batch, 1)
    assert bool(jnp.all((out > 0.0) & (out < 1.0)))
    ref = _reference(x, params)
    assert bool(jnp.max(jnp.abs(out - ref)) < 2e-2)

    print("KERNEL_OK")
</pallas_src>

<mosaic_0001>
module attributes {stable_mosaic.version = 11 : i64} {
  func.func @mlp_kernel(%arg0: i32, %arg1: memref<16x512xf32, #tpu.memory_space<vmem>>, %arg2: memref<128x16xbf16, #tpu.memory_space<vmem>>, %arg3: memref<128x1xf32, #tpu.memory_space<vmem>>, %arg4: memref<64x128xbf16, #tpu.memory_space<vmem>>, %arg5: memref<64x1xf32, #tpu.memory_space<vmem>>, %arg6: memref<32x64xbf16, #tpu.memory_space<vmem>>, %arg7: memref<32x1xf32, #tpu.memory_space<vmem>>, %arg8: memref<32x1xf32, #tpu.memory_space<vmem>>, %arg9: memref<1x1xf32, #tpu.memory_space<vmem>>, %arg10: memref<1x512xf32, #tpu.memory_space<vmem>>) attributes {dimension_semantics = [#tpu.dimension_semantics<parallel>], iteration_bounds = array<i64: 2>, scalar_prefetch = 0 : i64, scratch_operands = 0 : i64, tpu.core_type = #tpu.core_type<tc>, window_params = [{transform_indices = @transform_0, window_bounds = array<i64: 16, 512>}, {pipeline_mode = #tpu.pipeline_mode<synchronous>, transform_indices = @transform_1, window_bounds = array<i64: 128, 16>}, {pipeline_mode = #tpu.pipeline_mode<synchronous>, transform_indices = @transform_2, window_bounds = array<i64: 128, 1>}, {pipeline_mode = #tpu.pipeline_mode<synchronous>, transform_indices = @transform_3, window_bounds = array<i64: 64, 128>}, {pipeline_mode = #tpu.pipeline_mode<synchronous>, transform_indices = @transform_4, window_bounds = array<i64: 64, 1>}, {pipeline_mode = #tpu.pipeline_mode<synchronous>, transform_indices = @transform_5, window_bounds = array<i64: 32, 64>}, {pipeline_mode = #tpu.pipeline_mode<synchronous>, transform_indices = @transform_6, window_bounds = array<i64: 32, 1>}, {pipeline_mode = #tpu.pipeline_mode<synchronous>, transform_indices = @transform_7, window_bounds = array<i64: 32, 1>}, {pipeline_mode = #tpu.pipeline_mode<synchronous>, transform_indices = @transform_8, window_bounds = array<i64: 1, 1>}, {transform_indices = @transform_9, window_bounds = array<i64: 1, 512>}]} {
    %c0 = arith.constant 0 : index
    %c0_0 = arith.constant 0 : index
    %0 = vector.load %arg1[%c0, %c0_0] : memref<16x512xf32, #tpu.memory_space<vmem>>, vector<16x512xf32>
    %1 = arith.truncf %0 : vector<16x512xf32> to vector<16x512xbf16>
    %c0_1 = arith.constant 0 : index
    %c0_2 = arith.constant 0 : index
    %2 = vector.load %arg2[%c0_1, %c0_2] : memref<128x16xbf16, #tpu.memory_space<vmem>>, vector<128x16xbf16>
    %cst = arith.constant dense<0.000000e+00> : vector<128x512xf32>
    %3 = tpu.matmul %2, %1, %cst {dimension_numbers = #tpu.dot_dimension_numbers<[1], [0], [0], [1], [0, 0, 1, 1], [], []>} : vector<128x16xbf16>, vector<16x512xbf16>, vector<128x512xf32> -> vector<128x512xf32>
    %c0_3 = arith.constant 0 : index
    %c0_4 = arith.constant 0 : index
    %4 = vector.load %arg3[%c0_3, %c0_4] : memref<128x1xf32, #tpu.memory_space<vmem>>, vector<128x1xf32>
    %5 = vector.broadcast %4 : vector<128x1xf32> to vector<128x512xf32>
    %6 = arith.addf %3, %5 : vector<128x512xf32>
    %cst_5 = arith.constant 0.000000e+00 : f32
    %7 = vector.broadcast %cst_5 : f32 to vector<128x512xf32>
    %8 = arith.maximumf %6, %7 : vector<128x512xf32>
    %c0_6 = arith.constant 0 : index
    %c0_7 = arith.constant 0 : index
    %9 = vector.load %arg4[%c0_6, %c0_7] : memref<64x128xbf16, #tpu.memory_space<vmem>>, vector<64x128xbf16>
    %10 = arith.truncf %8 : vector<128x512xf32> to vector<128x512xbf16>
    %cst_8 = arith.constant dense<0.000000e+00> : vector<64x512xf32>
    %11 = tpu.matmul %9, %10, %cst_8 {dimension_numbers = #tpu.dot_dimension_numbers<[1], [0], [0], [1], [0, 0, 1, 1], [], []>} : vector<64x128xbf16>, vector<128x512xbf16>, vector<64x512xf32> -> vector<64x512xf32>
    %c0_9 = arith.constant 0 : index
    %c0_10 = arith.constant 0 : index
    %12 = vector.load %arg5[%c0_9, %c0_10] : memref<64x1xf32, #tpu.memory_space<vmem>>, vector<64x1xf32>
    %13 = vector.broadcast %12 : vector<64x1xf32> to vector<64x512xf32>
    %14 = arith.addf %11, %13 : vector<64x512xf32>
    %cst_11 = arith.constant 0.000000e+00 : f32
    %15 = vector.broadcast %cst_11 : f32 to vector<64x512xf32>
    %16 = arith.maximumf %14, %15 : vector<64x512xf32>
    %c0_12 = arith.constant 0 : index
    %c0_13 = arith.constant 0 : index
    %17 = vector.load %arg6[%c0_12, %c0_13] : memref<32x64xbf16, #tpu.memory_space<vmem>>, vector<32x64xbf16>
    %18 = arith.truncf %16 : vector<64x512xf32> to vector<64x512xbf16>
    %cst_14 = arith.constant dense<0.000000e+00> : vector<32x512xf32>
    %19 = tpu.matmul %17, %18, %cst_14 {dimension_numbers = #tpu.dot_dimension_numbers<[1], [0], [0], [1], [0, 0, 1, 1], [], []>} : vector<32x64xbf16>, vector<64x512xbf16>, vector<32x512xf32> -> vector<32x512xf32>
    %c0_15 = arith.constant 0 : index
    %c0_16 = arith.constant 0 : index
    %20 = vector.load %arg7[%c0_15, %c0_16] : memref<32x1xf32, #tpu.memory_space<vmem>>, vector<32x1xf32>
    %21 = vector.broadcast %20 : vector<32x1xf32> to vector<32x512xf32>
    %22 = arith.addf %19, %21 : vector<32x512xf32>
    %23 = math.tanh %22 : vector<32x512xf32>
    %c0_17 = arith.constant 0 : index
    %c0_18 = arith.constant 0 : index
    %24 = vector.load %arg8[%c0_17, %c0_18] : memref<32x1xf32, #tpu.memory_space<vmem>>, vector<32x1xf32>
    %25 = vector.broadcast %24 : vector<32x1xf32> to vector<32x512xf32>
    %26 = arith.mulf %23, %25 : vector<32x512xf32>
    %cst_19 = arith.constant dense<0.000000e+00> : vector<512xf32>
    %27 = vector.multi_reduction <add>, %26, %cst_19 [0] : vector<32x512xf32> to vector<512xf32>
    %28 = vector.shape_cast %27 : vector<512xf32> to vector<1x512xf32>
    %c0_20 = arith.constant 0 : index
    %c0_21 = arith.constant 0 : index
    %29 = vector.load %arg9[%c0_20, %c0_21] : memref<1x1xf32, #tpu.memory_space<vmem>>, vector<1x1xf32>
    %30 = vector.broadcast %29 : vector<1x1xf32> to vector<1x512xf32>
    %31 = arith.addf %28, %30 : vector<1x512xf32>
    %32 = arith.negf %31 : vector<1x512xf32>
    %33 = math.exp %32 : vector<1x512xf32>
    %cst_22 = arith.constant 1.000000e+00 : f32
    %34 = vector.broadcast %cst_22 : f32 to vector<1x512xf32>
    %35 = arith.addf %34, %33 : vector<1x512xf32>
    %36 = arith.divf %34, %35 : vector<1x512xf32>
    %c0_23 = arith.constant 0 : index
    %c0_24 = arith.constant 0 : index
    %37 = vector.load %arg10[%c0_23, %c0_24] : memref<1x512xf32, #tpu.memory_space<vmem>>, vector<1x512xf32>
    tpu.vector_store %arg10[%c0_23, %c0_24], %36 {strides = array<i32>} : memref<1x512xf32, #tpu.memory_space<vmem>>, vector<1x512xf32>,
    return
  }
  func.func @transform_0(%arg0: i32) -> (i32, i32) {
    %c0_i32 = arith.constant 0 : i32
    %c0_i32_0 = arith.constant 0 : i32
    return %c0_i32, %arg0 : i32, i32
  }
  func.func @transform_1(%arg0: i32) -> (i32, i32) {
    %c0_i32 = arith.constant 0 : i32
    %c0_i32_0 = arith.constant 0 : i32
    %c0_i32_1 = arith.constant 0 : i32
    return %c0_i32, %c0_i32_0 : i32, i32
  }
  func.func @transform_2(%arg0: i32) -> (i32, i32) {
    %c0_i32 = arith.constant 0 : i32
    %c0_i32_0 = arith.constant 0 : i32
    %c0_i32_1 = arith.constant 0 : i32
    return %c0_i32, %c0_i32_0 : i32, i32
  }
  func.func @transform_3(%arg0: i32) -> (i32, i32) {
    %c0_i32 = arith.constant 0 : i32
    %c0_i32_0 = arith.constant 0 : i32
    %c0_i32_1 = arith.constant 0 : i32
    return %c0_i32, %c0_i32_0 : i32, i32
  }
  func.func @transform_4(%arg0: i32) -> (i32, i32) {
    %c0_i32 = arith.constant 0 : i32
    %c0_i32_0 = arith.constant 0 : i32
    %c0_i32_1 = arith.constant 0 : i32
    return %c0_i32, %c0_i32_0 : i32, i32
  }
  func.func @transform_5(%arg0: i32) -> (i32, i32) {
    %c0_i32 = arith.constant 0 : i32
    %c0_i32_0 = arith.constant 0 : i32
    %c0_i32_1 = arith.constant 0 : i32
    return %c0_i32, %c0_i32_0 : i32, i32
  }
  func.func @transform_6(%arg0: i32) -> (i32, i32) {
    %c0_i32 = arith.constant 0 : i32
    %c0_i32_0 = arith.constant 0 : i32
    %c0_i32_1 = arith.constant 0 : i32
    return %c0_i32, %c0_i32_0 : i32, i32
  }
  func.func @transform_7(%arg0: i32) -> (i32, i32) {
    %c0_i32 = arith.constant 0 : i32
    %c0_i32_0 = arith.constant 0 : i32
    %c0_i32_1 = arith.constant 0 : i32
    return %c0_i32, %c0_i32_0 : i32, i32
  }
  func.func @transform_8(%arg0: i32) -> (i32, i32) {
    %c0_i32 = arith.constant 0 : i32
    %c0_i32_0 = arith.constant 0 : i32
    %c0_i32_1 = arith.constant 0 : i32
    return %c0_i32, %c0_i32_0 : i32, i32
  }
  func.func @transform_9(%arg0: i32) -> (i32, i32) {
    %c0_i32 = arith.constant 0 : i32
    %c0_i32_0 = arith.constant 0 : i32
    return %c0_i32, %arg0 : i32, i32
  }
}

</mosaic_0001>

<bundles_post_ra>
// kernel: tpu_custom_call.1
= control target key start
LH: loop header
LB: loop body
LE: loop exit
PB: predicated region body
PF: predicated region fallthrough
CT: control target
= control target key end

     0   :  { %s2125_s0 = inlined_call_operand.vmem [shape: f32[16,1024], index: 0, kind: input, shape index: {}]   ;;  %s2126_s1 = inlined_call_operand.vmem [shape: bf16[128,16], index: 1, kind: input, shape index: {}]   ;;  %s2127_s2 = inlined_call_operand.vmem [shape: f32[128,1], index: 2, kind: input, shape index: {}]   ;;  %s2128_s3 = inlined_call_operand.vmem [shape: bf16[64,128], index: 3, kind: input, shape index: {}]   ;;  %s2129_s4 = inlined_call_operand.vmem [shape: f32[64,1], index: 4, kind: input, shape index: {}]   ;;  %s2130_s5 = inlined_call_operand.vmem [shape: bf16[32,64], index: 5, kind: input, shape index: {}]   ;;  %s2131_s6 = inlined_call_operand.vmem [shape: f32[32,1], index: 6, kind: input, shape index: {}]   ;;  %s2132_s7 = inlined_call_operand.vmem [shape: f32[32,1], index: 7, kind: input, shape index: {}]   ;;  %s2133_s8 = inlined_call_operand.<no memory space> [shape: f32[1,1], index: 8, kind: input, shape index: {}]   ;;  %s2134_s9 = inlined_call_operand.hbm [shape: f32[1,1024], index: 9, kind: output, shape index: {}]  }
   0x1   :  { %v14_v0 = vstv %s2133_s8 }
   0x2   :  { %15 = vst [vmem:[#allocation2] sm:$0x1] %v14_v0 }
   0x3   :  { %16 = vsyncpa [#allocation5], 0 }
   0x4   :  { %18 = vsyncpa [#allocation5 + $0x1], 0  ;;  %s1829_s11 = smov 0   ;;  %s1831_s12 = smov 0  }
   0x5   :  { %s1833_s13 = smov 0   ;;  %s1835_s14 = smov 0  }
   0x6 LB: > { %s1549_s8 = sadd.s32 4294967295, %s1771_s14   ;;  %s1550_s15 = sadd.s32 4294967294, %s1771_s14   ;;  %s1771_s14 = sphi %s1835_s14, %s2140_s14   ;;  %s1767_s13 = sphi %s1833_s13, %s2139_s13   ;;  %s1763_s12 = sphi %s1831_s12, %s2138_s12   ;;  %s1759_s11 = sphi %s1829_s11, %s2137_s11  }
   0x7   : > { %s1852_s16 = sadd.s32 1, %s1771_s14   ;;  %s31_s17 = sadd.s32 1, %s1767_s13 }
   0x8   : > { %s28_s18 = ssub.s32 %s1771_s14, %s1852_s16  ;;  %p38_p0 = scmp.ne.s32.totalorder %s1767_s13, %s1763_s12 }
   0x9   : > { %p29_p1 = scmp.eq.s32.totalorder %s28_s18, 0  ;;  %p39_p2 = scmp.eq.s32.totalorder %s1771_s14, 0 }
   0xa   : > { %p236_p3 = scmp.eq.s32.totalorder %s1549_s8, 1  ;;  %p241_p4 = scmp.ne.s32.totalorder %s1763_s12, %s1759_s11 }
   0xb   : > { %s1865_s19 = scalar_select %p29_p1, %s1767_s13, %s31_s17  }
   0xc   : > { %p40_p5 = por %p39_p2, %p38_p0  ;;  %p1867_p6 = por %p236_p3, %p38_p0 }
   0xd   : > { %p242_p7 = scmp.eq.s32.totalorder %s1550_s15, 1  ;;  %p1552_p9 = scmp.ge.s32.totalorder %s1771_s14, 2 }
   0xf   : > { %p1871_p8 = por %p242_p7, %p241_p4  ;;  %282 = sbr.rel (%p1552_p9) target bundleno = 30 (0x1e), region = 48 }
  0x16   : > { %285 = sbr.rel (!%p40_p5) target bundleno = 30 (0x1e), region = 52  ;;  %s287_s22 = sand.u32 (%p40_p5), 1, %s1767_s13  }
  0x17   : > { %s1602_s23 = sshll.u32 (%p40_p5), %s1771_s14, 5  ;;  %s1553_s24 = sshll.u32 (%p40_p5), %s287_s22, 6 }
  0x18   : > { %s292_s27 = scalar_lea.vmem (%p40_p5), %s2125_s0, %s1602_s23  ;;  %s289_s28 = scalar_lea.vmem (%p40_p5), [#allocation3], %s1553_s24 }
  0x19   : > { %v305_v1 = vld [vmem:[%s292_s27] sm:$0xff] (%p40_p5)  ;;  %v307_v2 = vld [vmem:[%s292_s27 + $0x8] sm:$0xff] (%p40_p5)  ;;  %v309_v3 = vld [vmem:[%s292_s27 + $0x10] sm:$0xff] (%p40_p5) }
  0x1a   : > { %306 = vst [vmem:[%s289_s28] sm:$0xff] (%p40_p5), %v305_v1  ;;  %308 = vst [vmem:[%s289_s28 + $0x8] sm:$0xff] (%p40_p5), %v307_v2  ;;  %v311_v4 = vld [vmem:[%s292_s27 + $0x18] sm:$0xff] (%p40_p5)  ;;  %v313_v5 = vld [vmem:[%s292_s27 + $0x40] sm:$0xff] (%p40_p5) }
  0x1b   : > { %310 = vst [vmem:[%s289_s28 + $0x10] sm:$0xff] (%p40_p5), %v309_v3  ;;  %v315_v6 = vld [vmem:[%s292_s27 + $0x48] sm:$0xff] (%p40_p5)  ;;  %312 = vst [vmem:[%s289_s28 + $0x18] sm:$0xff] (%p40_p5), %v311_v4  ;;  %v317_v7 = vld [vmem:[%s292_s27 + $0x50] sm:$0xff] (%p40_p5) }
  0x1c   : > { %314 = vst [vmem:[%s289_s28 + $0x20] sm:$0xff] (%p40_p5), %v313_v5  ;;  %316 = vst [vmem:[%s289_s28 + $0x28] sm:$0xff] (%p40_p5), %v315_v6  ;;  %v319_v8 = vld [vmem:[%s292_s27 + $0x58] sm:$0xff] (%p40_p5) }
  0x1d   : > { %318 = vst [vmem:[%s289_s28 + $0x30] sm:$0xff] %v317_v7  ;;  %320 = vst [vmem:[%s289_s28 + $0x38] sm:$0xff] %v319_v8 }
  0x1e PF: > { %p1556_p10 = scmp.ge.s32.totalorder %s1771_s14, 1  ;;  %p325_p11 = scmp.lt.s32.totalorder %s1771_s14, 3 }
  0x20   : > { %p326_p12 = pnand %p1556_p10, %p325_p11 }
  0x21   : > { %s1886_s29 = sand.u32 (!%p326_p12), 1, %s1763_s12   ;;  %v1773_v9 = vmov (!%p326_p12), 0   ;;  %v1647_v22 = vld [vmem:[%s2126_s1] sm:$0xff] (!%p326_p12)   ;;  %vm534_vm0 = vcmask (!%p326_p12), 130048   ;;  %v400_v24 = vld [vmem:[%s2127_s2 + $0x10] sm:$0xff] (!%p326_p12)  ;;  %v399_v25 = vld [vmem:[%s2127_s2 + $0x8] sm:$0xff] (!%p326_p12) }
  0x22   : > { %329 = sbr.rel (%p326_p12) target bundleno = 880 (0x370), region = 75  ;;  %s1557_s30 = sshll.u32 (!%p326_p12), %s1886_s29, 6  ;;  %591 = vmatprep.mubr.bf16.mxu0 (!%p326_p12), %v1773_v9  ;;  %704 = vmatprep.mubr.bf16.mxu1 (!%p326_p12), %v1773_v9  ;;  %v398_v23 = vld [vmem:[%s2127_s2] sm:$0xff] (!%p326_p12)  ;;  %v401_v26 = vld [vmem:[%s2127_s2 + $0x18] sm:$0xff] (!%p326_p12)  ;;  %v1648_v28 = vld [vmem:[%s2126_s1 + $0x8] sm:$0xff] (!%p326_p12)   ;;  %vm1193_vm1 = vcmask (!%p326_p12), 523264  }
  0x23   : > { %1645 = vset.pattern.permute.xlu0 (!%p326_p12), %v1773_v9  ;;  %1646 = vset.pattern.permute.xlu1 (!%p326_p12), %v1773_v9  ;;  %s334_s10 = scalar_lea.vmem (!%p326_p12), [#allocation3], %s1557_s30  ;;  %v402_v27 = vld [vmem:[%s2127_s2 + $0x20] sm:$0xff] (!%p326_p12)  ;;  %v403_v29 = vld [vmem:[%s2127_s2 + $0x28] sm:$0xff] (!%p326_p12)  ;;  %v404_v30 = vld [vmem:[%s2127_s2 + $0x30] sm:$0xff] (!%p326_p12)  ;;  %s1558_s27 = sshll.u32 (!%p326_p12), %s1886_s29, 2 }
  0x24   : > { %v371_v10 = vld [vmem:[%s334_s10 + $0x8] sm:$0xff] (!%p326_p12)  ;;  %v373_v12 = vld [vmem:[%s334_s10 + $0x18] sm:$0xff] (!%p326_p12)  ;;  %v370_v15 = vld [vmem:[%s334_s10] sm:$0xff] (!%p326_p12)  ;;  %416 = vperm.xlu0 (!%p326_p12), %1645, %v398_v23   ;;  %426 = vperm.xlu1 (!%p326_p12), %1646, %v400_v24   ;;  %s1603_s28 = sshll.u32 (!%p326_p12), %s1549_s8, 6  ;;  %s366_s30 = scalar_lea.vmem (!%p326_p12), [#allocation4], %s1558_s27 }
  0x25   : > { %v375_v11 = vld [vmem:[%s334_s10 + $0x28] sm:$0xff] (!%p326_p12)  ;;  %v377_v14 = vld [vmem:[%s334_s10 + $0x38] sm:$0xff] (!%p326_p12)  ;;  %v374_v16 = vld [vmem:[%s334_s10 + $0x20] sm:$0xff] (!%p326_p12)  ;;  %s2081_s18 = scalar_lea.hbm (!%p326_p12), %s2134_s9, %s1603_s28  ;;  %s1471_s22 = scalar_lea.sflag (!%p326_p12), [#allocation5], %s1886_s29 }
  0x26   : > { %v379_v13 = vpack.c.bf16 (!%p326_p12), %v375_v11, %v371_v10  ;;  %v381_v17 = vpack.c.bf16 (!%p326_p12), %v377_v14, %v373_v12  ;;  %v378_v18 = vpack.c.bf16 (!%p326_p12), %v374_v16, %v370_v15  ;;  %v372_v19 = vld [vmem:[%s334_s10 + $0x10] sm:$0xff] (!%p326_p12)  ;;  %v406_v33 = vld [vmem:[%s2127_s2 + $0x40] sm:$0xff] (!%p326_p12)  ;;  %v407_v34 = vld [vmem:[%s2127_s2 + $0x48] sm:$0xff] (!%p326_p12)  ;;  %s1775_s8 = smov (!%p326_p12), [#allocation4]  }
  0x27   : > { %v376_v20 = vld [vmem:[%s334_s10 + $0x30] sm:$0xff] (!%p326_p12)  ;;  %v410_v37 = vld [vmem:[%s2127_s2 + $0x60] sm:$0xff] (!%p326_p12)  ;;  %v411_v39 = vld [vmem:[%s2127_s2 + $0x68] sm:$0xff] (!%p326_p12)  ;;  %s1485_s10 = sshll.u32 (!%p326_p12), %s366_s30, 4  ;;  %s1713_s24 = sshll.u32 (!%p326_p12), %s1775_s8, 4  ;;  %s2083_s10 = int_to_ptr.vmem [resolvable:$true] %s1485_s10  ;;  %s1714_s24 = int_to_ptr.vmem [resolvable:$false] %s1713_s24 }
  0x28   : > { %559 = vmatprep.subr.bf16.mxu0 (!%p326_p12), %v379_v13  ;;  %v380_v21 = vpack.c.bf16 (!%p326_p12), %v376_v20, %v372_v19  ;;  %672 = vmatprep.subr.bf16.mxu1 (!%p326_p12), %v381_v17  ;;  %v405_v31 = vld [vmem:[%s2127_s2 + $0x38] sm:$0xff] (!%p326_p12)  ;;  %v1649_v32 = vld [vmem:[%s2126_s1 + $0x10] sm:$0xff] (!%p326_p12)   ;;  %v889_v42 = vld [vmem:[%s2129_s4] sm:$0xff] (!%p326_p12)  ;;  %s1709_s23 = scalar_lea.vmem (!%p326_p12), %s2083_s10, 64  ;;  %s1715_s25 = scalar_lea.vmem (!%p326_p12), %s1714_s24, 128 }
  0x29   : > { %560 = vmatpush1.bf16.msra.mxu0 %v378_v18  ;;  %421 = vperm.xlu0 %1645, %v399_v25   ;;  %v408_v35 = vld [vmem:[%s2127_s2 + $0x50] sm:$0xff]  ;;  %v409_v36 = vld [vmem:[%s2127_s2 + $0x58] sm:$0xff]  ;;  %v1651_v43 = vld [vmem:[%s2126_s1 + $0x20] sm:$0xff]   ;;  %p1710_p13 = scmp.ne.s32.totalorder %s2083_s10, %s1709_s23  ;;  %p1716_p2 = scmp.lt.s32.totalorder %s2083_s10, %s1714_s24 }
  0x2a   : > { %673 = vmatpush1.bf16.msra.mxu1 %v380_v21  ;;  %431 = vperm.xlu1 %1646, %v401_v26   ;;  %v1650_v38 = vld [vmem:[%s2126_s1 + $0x18] sm:$0xff]   ;;  %v412_v40 = vld [vmem:[%s2127_s2 + $0x70] sm:$0xff]  ;;  %v890_v44 = vld [vmem:[%s2129_s4 + $0x8] sm:$0xff]  ;;  %p1717_p3 = scmp.lt.s32.totalorder %s1715_s25, %s1709_s23 }
  0x2b   : > { %v413_v41 = vld [vmem:[%s2127_s2 + $0x78] sm:$0xff]  ;;  %v891_v45 = vld [vmem:[%s2129_s4 + $0x10] sm:$0xff]  ;;  %v893_v47 = vld [vmem:[%s2129_s4 + $0x20] sm:$0xff]  ;;  %p1711_p0 = pnand %p1710_p13, %p1867_p6 }
  0x2c   : > { %1567 = vmatmul.mubr.msk.bf16.vlgmr.msra.gmra.mrb[0].mxu0 %vm534_vm0, %v1647_v22  ;;  %v892_v46 = vld [vmem:[%s2129_s4 + $0x18] sm:$0xff]  ;;  %v1652_v48 = vld [vmem:[%s2126_s1 + $0x28] sm:$0xff]   ;;  %v895_v50 = vld [vmem:[%s2129_s4 + $0x30] sm:$0xff]  ;;  %p1718_p4 = por %p1717_p3, %p1716_p2 }
  0x2d   : > { %1575 = vmatmul.mubr.msk.bf16.vlgmr.msra.gmra.mrb[0].mxu1 %vm534_vm0, %v1647_v22  ;;  %601 = vmatprep.mubr.bf16.mxu0 %v1773_v9  ;;  %v894_v49 = vld [vmem:[%s2129_s4 + $0x28] sm:$0xff]  ;;  %v896_v51 = vld [vmem:[%s2129_s4 + $0x38] sm:$0xff]  ;;  %v1159_v52 = vld [vmem:[%s2131_s6] sm:$0xff]  ;;  %p1712_p1 = pneg %p1711_p0 }
  0x2e   : > { %714 = vmatprep.mubr.bf16.mxu1 %v1773_v9  ;;  %436 = vperm.xlu0 %1645, %v402_v27   ;;  %v1653_v53 = vld [vmem:[%s2126_s1 + $0x30] sm:$0xff]   ;;  %v1160_v54 = vld [vmem:[%s2131_s6 + $0x8] sm:$0xff]  ;;  %v1162_v56 = vld [vmem:[%s2131_s6 + $0x18] sm:$0xff] }
  0x2f   : > { %441 = vperm.xlu1 %1646, %v403_v29   ;;  %v1161_v55 = vld [vmem:[%s2131_s6 + $0x10] sm:$0xff]  ;;  %v1322_v57 = vld [vmem:[%s2132_s7] sm:$0xff]  ;;  %v1654_v58 = vld [vmem:[%s2126_s1 + $0x38] sm:$0xff]   ;;  %p1719_p5 = pnand %p1718_p4, %p1712_p1 }
  0x30   : > { %v1323_v59 = vld [vmem:[%s2132_s7 + $0x8] sm:$0xff]  ;;  %v1324_v60 = vld [vmem:[%s2132_s7 + $0x10] sm:$0xff]  ;;  %v1325_v61 = vld [vmem:[%s2132_s7 + $0x18] sm:$0xff] }
  0x31   : > { %v1398_v62 = vld [vmem:[#allocation2] sm:$0x1] }
  0x32   : > { %446 = vperm.xlu0 %1645, %v404_v30  }
  0x33   : > { %451 = vperm.xlu1 %1646, %v405_v31  }
  0x34   : > { %1568 = vmatmul.mubr.msk.bf16.gmra.mrb[4].mxu0 %vm534_vm0, %v1648_v28 }
  0x35   : > { %1576 = vmatmul.mubr.msk.bf16.gmra.mrb[4].mxu1 %vm534_vm0, %v1648_v28  ;;  %611 = vmatprep.mubr.bf16.mxu0 %v1773_v9 }
  0x36   : > { %724 = vmatprep.mubr.bf16.mxu1 %v1773_v9  ;;  %456 = vperm.xlu0 %1645, %v406_v33  }
  0x37   : > { %461 = vperm.xlu1 %1646, %v407_v34  }
  0x3a   : > { %466 = vperm.xlu0 %1645, %v408_v35  }
  0x3b   : > { %471 = vperm.xlu1 %1646, %v409_v36  }
  0x3c   : > { %1569 = vmatmul.mubr.msk.bf16.gmra.mrb[8].mxu0 %vm534_vm0, %v1649_v32 }
  0x3d   : > { %1577 = vmatmul.mubr.msk.bf16.gmra.mrb[8].mxu1 %vm534_vm0, %v1649_v32  ;;  %621 = vmatprep.mubr.bf16.mxu0 %v1773_v9 }
  0x3e   : > { %734 = vmatprep.mubr.bf16.mxu1 %v1773_v9  ;;  %476 = vperm.xlu0 %1645, %v410_v37  }
  0x3f   : > { %481 = vperm.xlu1 %1646, %v411_v39  }
  0x42   : > { %486 = vperm.xlu0 %1645, %v412_v40  }
  0x43   : > { %491 = vperm.xlu1 %1646, %v413_v41  }
  0x44   : > { %1570 = vmatmul.mubr.msk.bf16.gmra.mrb[12].mxu0 %vm534_vm0, %v1650_v38 }
  0x45   : > { %1578 = vmatmul.mubr.msk.bf16.gmra.mrb[12].mxu1 %vm534_vm0, %v1650_v38  ;;  %631 = vmatprep.mubr.bf16.mxu0 %v1773_v9 }
  0x46   : > { %744 = vmatprep.mubr.bf16.mxu1 %v1773_v9  ;;  %899 = vperm.xlu0 %1645, %v889_v42  }
  0x47   : > { %904 = vperm.xlu1 %1646, %v890_v44  }
  0x4a   : > { %909 = vperm.xlu0 %1645, %v891_v45  }
  0x4b   : > { %914 = vperm.xlu1 %1646, %v892_v46  }
  0x4c   : > { %1571 = vmatmul.mubr.msk.bf16.gmra.mrb[16].mxu0 %vm534_vm0, %v1651_v43 }
  0x4d   : > { %1579 = vmatmul.mubr.msk.bf16.gmra.mrb[16].mxu1 %vm534_vm0, %v1651_v43  ;;  %641 = vmatprep.mubr.bf16.mxu0 %v1773_v9 }
  0x4e   : > { %754 = vmatprep.mubr.bf16.mxu1 %v1773_v9  ;;  %919 = vperm.xlu0 %1645, %v893_v47  }
  0x4f   : > { %924 = vperm.xlu1 %1646, %v894_v49  }
  0x52   : > { %929 = vperm.xlu0 %1645, %v895_v50  }
  0x53   : > { %934 = vperm.xlu1 %1646, %v896_v51  }
  0x54   : > { %1572 = vmatmul.mubr.msk.bf16.gmra.mrb[20].mxu0 %vm534_vm0, %v1652_v48 }
  0x55   : > { %1580 = vmatmul.mubr.msk.bf16.gmra.mrb[20].mxu1 %vm534_vm0, %v1652_v48  ;;  %651 = vmatprep.mubr.bf16.mxu0 %v1773_v9 }
  0x56   : > { %764 = vmatprep.mubr.bf16.mxu1 %v1773_v9  ;;  %1165 = vperm.xlu0 %1645, %v1159_v52  }
  0x57   : > { %1170 = vperm.xlu1 %1646, %v1160_v54  }
  0x5a   : > { %1175 = vperm.xlu0 %1645, %v1161_v55  }
  0x5b   : > { %1180 = vperm.xlu1 %1646, %v1162_v56  }
  0x5c   : > { %1573 = vmatmul.mubr.msk.bf16.gmra.mrb[24].mxu0 %vm534_vm0, %v1653_v53 }
  0x5d   : > { %1581 = vmatmul.mubr.msk.bf16.gmra.mrb[24].mxu1 %vm534_vm0, %v1653_v53  ;;  %661 = vmatprep.mubr.bf16.mxu0 %v1773_v9 }
  0x5e   : > { %774 = vmatprep.mubr.bf16.mxu1 %v1773_v9  ;;  %1328 = vperm.xlu0 %1645, %v1322_v57  }
  0x5f   : > { %1333 = vperm.xlu1 %1646, %v1323_v59  }
  0x62   : > { %1338 = vperm.xlu0 %1645, %v1324_v60  }
  0x63   : > { %1343 = vperm.xlu1 %1646, %v1325_v61  }
  0x64   : > { %1574 = vmatmul.mubr.msk.bf16.gmra.mrb[28].mxu0 %vm534_vm0, %v1654_v58 }
  0x65   : > { %1582 = vmatmul.mubr.msk.bf16.gmra.mrb[28].mxu1 %vm534_vm0, %v1654_v58  ;;  %993 = vmatprep.mubr.bf16.mxu0 %v1773_v9 }
  0x66   : > { %1066 = vmatprep.mubr.bf16.mxu1 %v1773_v9  ;;  %1401 = vperm.xlu0 %1645, %v1398_v62  }
  0xa3   : > { %v417_v63 = vpop.permute.xlu0 %416  ;;  %v427_v0 = vpop.permute.xlu1 %426 }
  0xa8   : > { %v422_v1 = vpop.permute.xlu0 %421 }
  0xa9   : > { %v432_v28 = vpop.permute.xlu1 %431 }
  0xad   : > { %v437_v54 = vpop.permute.xlu0 %436 }
  0xae   : > { %v442_v58 = vpop.permute.xlu1 %441 }
  0xff   : > { %v593_v2 = vpop.f32.mrb[0].mxu0 }
 0x100   : > { %v594_v3 = vadd.f32 %v593_v2, %v417_v63  ;;  %v706_v4 = vpop.f32.mrb[0].mxu1  ;;  %v595_v5 = vpop.f32.mrb[1].mxu0 }
 0x101   : > { %v707_v6 = vadd.f32 %v706_v4, %v417_v63  ;;  %v596_v7 = vadd.f32 %v595_v5, %v417_v63  ;;  %v708_v8 = vpop.f32.mrb[1].mxu1  ;;  %v597_v10 = vpop.f32.mrb[2].mxu0 }
 0x102   : > { %v709_v11 = vadd.f32 %v708_v8, %v417_v63  ;;  %v598_v12 = vadd.f32 %v597_v10, %v422_v1  ;;  %v710_v13 = vpop.f32.mrb[2].mxu1  ;;  %v599_v14 = vpop.f32.mrb[3].mxu0  ;;  %v785_v18 = vmax.f32 %v594_v3, 0.0 }
 0x103   : > { %v711_v15 = vadd.f32 %v710_v13, %v422_v1  ;;  %v600_v16 = vadd.f32 %v599_v14, %v422_v1  ;;  %v712_v17 = vpop.f32.mrb[3].mxu1  ;;  %v787_v21 = vmax.f32 %v707_v6, 0.0  ;;  %v786_v22 = vmax.f32 %v596_v7, 0.0 }
 0x104   : > { %v789_v19 = vmax.f32 %v598_v12, 0.0  ;;  %v713_v20 = vadd.f32 %v712_v17, %v422_v1  ;;  %v788_v25 = vmax.f32 %v709_v11, 0.0 }
 0x105   : > { %v791_v23 = vmax.f32 %v711_v15, 0.0  ;;  %v790_v24 = vmax.f32 %v600_v16, 0.0 }
 0x106   : > { %v857_v26 = vpack.c.bf16 %v789_v19, %v785_v18  ;;  %v792_v27 = vmax.f32 %v713_v20, 0.0 }
 0x107   : > { %v859_v29 = vpack.c.bf16 %v791_v23, %v787_v21  ;;  %v858_v30 = vpack.c.bf16 %v790_v24, %v786_v22  ;;  %v603_v31 = vpop.f32.mrb[4].mxu0  ;;  %v447_v21 = vpop.permute.xlu0 %446 }
 0x108   : > { %v860_v32 = vpack.c.bf16 %v792_v27, %v788_v25  ;;  %v604_v33 = vadd.f32 %v603_v31, %v427_v0  ;;  %v716_v34 = vpop.f32.mrb[4].mxu1  ;;  %v605_v35 = vpop.f32.mrb[5].mxu0 }
 0x109   : > { %v717_v36 = vadd.f32 %v716_v34, %v427_v0  ;;  %v606_v37 = vadd.f32 %v605_v35, %v427_v0  ;;  %v718_v38 = vpop.f32.mrb[5].mxu1  ;;  %v607_v39 = vpop.f32.mrb[6].mxu0  ;;  %961 = vmatprep.subr.bf16.mxu0 %v858_v30 }
 0x10a   : > { %v719_v40 = vadd.f32 %v718_v38, %v427_v0  ;;  %v608_v41 = vadd.f32 %v607_v39, %v432_v28  ;;  %v720_v42 = vpop.f32.mrb[6].mxu1  ;;  %1034 = vmatprep.subr.bf16.mxu1 %v860_v32  ;;  %v609_v43 = vpop.f32.mrb[7].mxu0  ;;  %962 = vmatpush1.bf16.msra.mxu0 %v857_v26  ;;  %v793_v47 = vmax.f32 %v604_v33, 0.0 }
 0x10b   : > { %v721_v44 = vadd.f32 %v720_v42, %v432_v28  ;;  %v610_v45 = vadd.f32 %v609_v43, %v432_v28  ;;  %v722_v46 = vpop.f32.mrb[7].mxu1  ;;  %1035 = vmatpush1.bf16.msra.mxu1 %v859_v29  ;;  %v795_v50 = vmax.f32 %v717_v36, 0.0  ;;  %v794_v51 = vmax.f32 %v606_v37, 0.0  ;;  %v452_v25 = vpop.permute.xlu1 %451 }
 0x10c   : > { %v797_v48 = vmax.f32 %v608_v41, 0.0  ;;  %v723_v49 = vadd.f32 %v722_v46, %v432_v28  ;;  %v796_v55 = vmax.f32 %v719_v40, 0.0 }
 0x10d   : > { %v799_v52 = vmax.f32 %v721_v44, 0.0  ;;  %v798_v53 = vmax.f32 %v610_v45, 0.0 }
 0x10e   : > { %v861_v56 = vpack.c.bf16 %v797_v48, %v793_v47  ;;  %v800_v57 = vmax.f32 %v723_v49, 0.0 }
 0x10f   : > { %v863_v59 = vpack.c.bf16 %v799_v52, %v795_v50  ;;  %v862_v60 = vpack.c.bf16 %v798_v53, %v794_v51  ;;  %v613_v61 = vpop.f32.mrb[8].mxu0  ;;  %v457_v51 = vpop.permute.xlu0 %456 }
 0x110   : > { %v864_v62 = vpack.c.bf16 %v800_v57, %v796_v55  ;;  %v614_v63 = vadd.f32 %v613_v61, %v437_v54  ;;  %v726_v0 = vpop.f32.mrb[8].mxu1  ;;  %v615_v1 = vpop.f32.mrb[9].mxu0 }
 0x111   : > { %v727_v2 = vadd.f32 %v726_v0, %v437_v54  ;;  %v616_v3 = vadd.f32 %v615_v1, %v437_v54  ;;  %v728_v4 = vpop.f32.mrb[9].mxu1  ;;  %v617_v5 = vpop.f32.mrb[10].mxu0  ;;  %963 = vmatprep.subr.bf16.mxu0 %v862_v60 }
 0x112   : > { %v729_v6 = vadd.f32 %v728_v4, %v437_v54  ;;  %v618_v7 = vadd.f32 %v617_v5, %v442_v58  ;;  %v730_v8 = vpop.f32.mrb[10].mxu1  ;;  %1036 = vmatprep.subr.bf16.mxu1 %v864_v62  ;;  %v619_v10 = vpop.f32.mrb[11].mxu0  ;;  %964 = vmatpush1.bf16.msra.mxu0 %v861_v56  ;;  %v801_v14 = vmax.f32 %v614_v63, 0.0 }
 0x113   : > { %v731_v11 = vadd.f32 %v730_v8, %v442_v58  ;;  %v620_v12 = vadd.f32 %v619_v10, %v442_v58  ;;  %v732_v13 = vpop.f32.mrb[11].mxu1  ;;  %1037 = vmatpush1.bf16.msra.mxu1 %v863_v59  ;;  %v803_v17 = vmax.f32 %v727_v2, 0.0  ;;  %v802_v18 = vmax.f32 %v616_v3, 0.0  ;;  %v462_v55 = vpop.permute.xlu1 %461 }
 0x114   : > { %v805_v15 = vmax.f32 %v618_v7, 0.0  ;;  %v733_v16 = vadd.f32 %v732_v13, %v442_v58  ;;  %v804_v22 = vmax.f32 %v729_v6, 0.0 }
 0x115   : > { %v807_v19 = vmax.f32 %v731_v11, 0.0  ;;  %v806_v20 = vmax.f32 %v620_v12, 0.0 }
 0x116   : > { %v865_v23 = vpack.c.bf16 %v805_v15, %v801_v14  ;;  %v808_v24 = vmax.f32 %v733_v16, 0.0 }
 0x117   : > { %v867_v26 = vpack.c.bf16 %v807_v19, %v803_v17  ;;  %v866_v27 = vpack.c.bf16 %v806_v20, %v802_v18  ;;  %v623_v28 = vpop.f32.mrb[12].mxu0  ;;  %v467_v18 = vpop.permute.xlu0 %466 }
 0x118   : > { %v868_v29 = vpack.c.bf16 %v808_v24, %v804_v22  ;;  %v624_v30 = vadd.f32 %v623_v28, %v447_v21  ;;  %v736_v31 = vpop.f32.mrb[12].mxu1  ;;  %v625_v32 = vpop.f32.mrb[13].mxu0 }
 0x119   : > { %v737_v33 = vadd.f32 %v736_v31, %v447_v21  ;;  %v626_v34 = vadd.f32 %v625_v32, %v447_v21  ;;  %v738_v35 = vpop.f32.mrb[13].mxu1  ;;  %v627_v36 = vpop.f32.mrb[14].mxu0  ;;  %965 = vmatprep.subr.bf16.mxu0 %v866_v27 }
 0x11a   : > { %v739_v37 = vadd.f32 %v738_v35, %v447_v21  ;;  %v628_v38 = vadd.f32 %v627_v36, %v452_v25  ;;  %v740_v39 = vpop.f32.mrb[14].mxu1  ;;  %1038 = vmatprep.subr.bf16.mxu1 %v868_v29  ;;  %v629_v40 = vpop.f32.mrb[15].mxu0  ;;  %966 = vmatpush1.bf16.msra.mxu0 %v865_v23  ;;  %v809_v44 = vmax.f32 %v624_v30, 0.0 }
 0x11b   : > { %v741_v41 = vadd.f32 %v740_v39, %v452_v25  ;;  %v630_v42 = vadd.f32 %v629_v40, %v452_v25  ;;  %v742_v43 = vpop.f32.mrb[15].mxu1  ;;  %1039 = vmatpush1.bf16.msra.mxu1 %v867_v26  ;;  %v811_v47 = vmax.f32 %v737_v33, 0.0  ;;  %v810_v48 = vmax.f32 %v626_v34, 0.0  ;;  %v472_v22 = vpop.permute.xlu1 %471 }
 0x11c   : > { %v813_v45 = vmax.f32 %v628_v38, 0.0  ;;  %v743_v46 = vadd.f32 %v742_v43, %v452_v25  ;;  %v812_v52 = vmax.f32 %v739_v37, 0.0 }
 0x11d   : > { %v815_v49 = vmax.f32 %v741_v41, 0.0  ;;  %v814_v50 = vmax.f32 %v630_v42, 0.0 }
 0x11e   : > { %v869_v53 = vpack.c.bf16 %v813_v45, %v809_v44  ;;  %v816_v54 = vmax.f32 %v743_v46, 0.0 }
 0x11f   : > { %v871_v56 = vpack.c.bf16 %v815_v49, %v811_v47  ;;  %v870_v57 = vpack.c.bf16 %v814_v50, %v810_v48  ;;  %v633_v58 = vpop.f32.mrb[16].mxu0  ;;  %v477_v48 = vpop.permute.xlu0 %476 }
 0x120   : > { %v872_v59 = vpack.c.bf16 %v816_v54, %v812_v52  ;;  %v634_v60 = vadd.f32 %v633_v58, %v457_v51  ;;  %v746_v61 = vpop.f32.mrb[16].mxu1  ;;  %v635_v62 = vpop.f32.mrb[17].mxu0 }
 0x121   : > { %v747_v63 = vadd.f32 %v746_v61, %v457_v51  ;;  %v636_v0 = vadd.f32 %v635_v62, %v457_v51  ;;  %v748_v1 = vpop.f32.mrb[17].mxu1  ;;  %v637_v2 = vpop.f32.mrb[18].mxu0  ;;  %967 = vmatprep.subr.bf16.mxu0 %v870_v57 }
 0x122   : > { %v749_v3 = vadd.f32 %v748_v1, %v457_v51  ;;  %v638_v4 = vadd.f32 %v637_v2, %v462_v55  ;;  %v750_v5 = vpop.f32.mrb[18].mxu1  ;;  %1040 = vmatprep.subr.bf16.mxu1 %v872_v59  ;;  %v639_v6 = vpop.f32.mrb[19].mxu0  ;;  %968 = vmatpush1.bf16.msra.mxu0 %v869_v53  ;;  %v817_v11 = vmax.f32 %v634_v60, 0.0 }
 0x123   : > { %v751_v7 = vadd.f32 %v750_v5, %v462_v55  ;;  %v640_v8 = vadd.f32 %v639_v6, %v462_v55  ;;  %v752_v10 = vpop.f32.mrb[19].mxu1  ;;  %1041 = vmatpush1.bf16.msra.mxu1 %v871_v56  ;;  %v819_v14 = vmax.f32 %v747_v63, 0.0  ;;  %v818_v15 = vmax.f32 %v636_v0, 0.0  ;;  %v482_v52 = vpop.permute.xlu1 %481 }
 0x124   : > { %v821_v12 = vmax.f32 %v638_v4, 0.0  ;;  %v753_v13 = vadd.f32 %v752_v10, %v462_v55  ;;  %v820_v19 = vmax.f32 %v749_v3, 0.0 }
 0x125   : > { %v823_v16 = vmax.f32 %v751_v7, 0.0  ;;  %v822_v17 = vmax.f32 %v640_v8, 0.0 }
 0x126   : > { %v873_v20 = vpack.c.bf16 %v821_v12, %v817_v11  ;;  %v824_v21 = vmax.f32 %v753_v13, 0.0 }
 0x127   : > { %v875_v23 = vpack.c.bf16 %v823_v16, %v819_v14  ;;  %v874_v24 = vpack.c.bf16 %v822_v17, %v818_v15  ;;  %v643_v25 = vpop.f32.mrb[20].mxu0  ;;  %v487_v15 = vpop.permute.xlu0 %486 }
 0x128   : > { %v876_v26 = vpack.c.bf16 %v824_v21, %v820_v19  ;;  %v644_v27 = vadd.f32 %v643_v25, %v467_v18  ;;  %v756_v28 = vpop.f32.mrb[20].mxu1  ;;  %v645_v29 = vpop.f32.mrb[21].mxu0 }
 0x129   : > { %v757_v30 = vadd.f32 %v756_v28, %v467_v18  ;;  %v646_v31 = vadd.f32 %v645_v29, %v467_v18  ;;  %v758_v32 = vpop.f32.mrb[21].mxu1  ;;  %v647_v33 = vpop.f32.mrb[22].mxu0  ;;  %969 = vmatprep.subr.bf16.mxu0 %v874_v24 }
 0x12a   : > { %v759_v34 = vadd.f32 %v758_v32, %v467_v18  ;;  %v648_v35 = vadd.f32 %v647_v33, %v472_v22  ;;  %v760_v36 = vpop.f32.mrb[22].mxu1  ;;  %1042 = vmatprep.subr.bf16.mxu1 %v876_v26  ;;  %v649_v37 = vpop.f32.mrb[23].mxu0  ;;  %970 = vmatpush1.bf16.msra.mxu0 %v873_v20  ;;  %v825_v41 = vmax.f32 %v644_v27, 0.0 }
 0x12b   : > { %v761_v38 = vadd.f32 %v760_v36, %v472_v22  ;;  %v650_v39 = vadd.f32 %v649_v37, %v472_v22  ;;  %v762_v40 = vpop.f32.mrb[23].mxu1  ;;  %1043 = vmatpush1.bf16.msra.mxu1 %v875_v23  ;;  %v827_v44 = vmax.f32 %v757_v30, 0.0  ;;  %v826_v45 = vmax.f32 %v646_v31, 0.0  ;;  %v492_v19 = vpop.permute.xlu1 %491 }
 0x12c   : > { %v829_v42 = vmax.f32 %v648_v35, 0.0  ;;  %v763_v43 = vadd.f32 %v762_v40, %v472_v22  ;;  %v828_v49 = vmax.f32 %v759_v34, 0.0 }
 0x12d   : > { %v831_v46 = vmax.f32 %v761_v38, 0.0  ;;  %v830_v47 = vmax.f32 %v650_v39, 0.0 }
 0x12e   : > { %v877_v50 = vpack.c.bf16 %v829_v42, %v825_v41  ;;  %v832_v51 = vmax.f32 %v763_v43, 0.0 }
 0x12f   : > { %v879_v53 = vpack.c.bf16 %v831_v46, %v827_v44  ;;  %v878_v54 = vpack.c.bf16 %v830_v47, %v826_v45  ;;  %v653_v55 = vpop.f32.mrb[24].mxu0 }
 0x130   : > { %v880_v56 = vpack.c.bf16 %v832_v51, %v828_v49  ;;  %v654_v57 = vadd.f32 %v653_v55, %v477_v48  ;;  %v766_v58 = vpop.f32.mrb[24].mxu1  ;;  %v655_v59 = vpop.f32.mrb[25].mxu0  ;;  %v1655_v51 = vld [vmem:[%s2128_s3] sm:$0xff]  }
 0x131   : > { %v767_v60 = vadd.f32 %v766_v58, %v477_v48  ;;  %v656_v61 = vadd.f32 %v655_v59, %v477_v48  ;;  %v768_v62 = vpop.f32.mrb[25].mxu1  ;;  %v657_v63 = vpop.f32.mrb[26].mxu0  ;;  %971 = vmatprep.subr.bf16.mxu0 %v878_v54  ;;  %v1658_v54 = vld [vmem:[%s2128_s3 + $0x18] sm:$0xff]  }
 0x132   : > { %v769_v0 = vadd.f32 %v768_v62, %v477_v48  ;;  %v658_v1 = vadd.f32 %v657_v63, %v482_v52  ;;  %v770_v2 = vpop.f32.mrb[26].mxu1  ;;  %1044 = vmatprep.subr.bf16.mxu1 %v880_v56  ;;  %v659_v3 = vpop.f32.mrb[27].mxu0  ;;  %972 = vmatpush1.bf16.msra.mxu0 %v877_v50  ;;  %v833_v7 = vmax.f32 %v654_v57, 0.0 }
 0x133   : > { %v771_v4 = vadd.f32 %v770_v2, %v482_v52  ;;  %v660_v5 = vadd.f32 %v659_v3, %v482_v52  ;;  %v772_v6 = vpop.f32.mrb[27].mxu1  ;;  %1045 = vmatpush1.bf16.msra.mxu1 %v879_v53  ;;  %v835_v11 = vmax.f32 %v767_v60, 0.0  ;;  %v834_v12 = vmax.f32 %v656_v61, 0.0  ;;  %v1657_v53 = vld [vmem:[%s2128_s3 + $0x10] sm:$0xff]   ;;  %v900_v55 = vpop.permute.xlu0 %899 }
 0x134   : > { %v837_v8 = vmax.f32 %v658_v1, 0.0  ;;  %v773_v10 = vadd.f32 %v772_v6, %v482_v52  ;;  %v836_v16 = vmax.f32 %v769_v0, 0.0  ;;  %v1656_v52 = vld [vmem:[%s2128_s3 + $0x8] sm:$0xff]   ;;  %v905_v56 = vpop.permute.xlu1 %904 }
 0x135   : > { %v839_v13 = vmax.f32 %v771_v4, 0.0  ;;  %v838_v14 = vmax.f32 %v660_v5, 0.0 }
 0x136   : > { %v881_v17 = vpack.c.bf16 %v837_v8, %v833_v7  ;;  %v840_v18 = vmax.f32 %v773_v10, 0.0 }
 0x137   : > { %v883_v20 = vpack.c.bf16 %v839_v13, %v835_v11  ;;  %v882_v21 = vpack.c.bf16 %v838_v14, %v834_v12  ;;  %v663_v22 = vpop.f32.mrb[28].mxu0 }
 0x138   : > { %v884_v23 = vpack.c.bf16 %v840_v18, %v836_v16  ;;  %v664_v24 = vadd.f32 %v663_v22, %v487_v15  ;;  %v776_v25 = vpop.f32.mrb[28].mxu1  ;;  %v665_v26 = vpop.f32.mrb[29].mxu0 }
 0x139   : > { %v777_v27 = vadd.f32 %v776_v25, %v487_v15  ;;  %v666_v28 = vadd.f32 %v665_v26, %v487_v15  ;;  %v778_v29 = vpop.f32.mrb[29].mxu1  ;;  %v667_v30 = vpop.f32.mrb[30].mxu0  ;;  %973 = vmatprep.subr.bf16.mxu0 %v882_v21 }
 0x13a   : > { %v779_v31 = vadd.f32 %v778_v29, %v487_v15  ;;  %v668_v32 = vadd.f32 %v667_v30, %v492_v19  ;;  %v780_v33 = vpop.f32.mrb[30].mxu1  ;;  %1046 = vmatprep.subr.bf16.mxu1 %v884_v23  ;;  %v669_v34 = vpop.f32.mrb[31].mxu0  ;;  %974 = vmatpush1.bf16.msra.mxu0 %v881_v17  ;;  %v841_v38 = vmax.f32 %v664_v24, 0.0 }
 0x13b   : > { %v781_v35 = vadd.f32 %v780_v33, %v492_v19  ;;  %v670_v36 = vadd.f32 %v669_v34, %v492_v19  ;;  %v782_v37 = vpop.f32.mrb[31].mxu1  ;;  %1047 = vmatpush1.bf16.msra.mxu1 %v883_v20  ;;  %v843_v41 = vmax.f32 %v777_v27, 0.0  ;;  %v842_v42 = vmax.f32 %v666_v28, 0.0  ;;  %v910_v16 = vpop.permute.xlu0 %909 }
 0x13c   : > { %v845_v39 = vmax.f32 %v668_v32, 0.0  ;;  %v783_v40 = vadd.f32 %v782_v37, %v492_v19  ;;  %v844_v45 = vmax.f32 %v779_v31, 0.0  ;;  %v915_v20 = vpop.permute.xlu1 %914 }
 0x13d   : > { %v847_v43 = vmax.f32 %v781_v35, 0.0  ;;  %v846_v44 = vmax.f32 %v670_v36, 0.0 }
 0x13e   : > { %v885_v46 = vpack.c.bf16 %v845_v39, %v841_v38  ;;  %v848_v47 = vmax.f32 %v783_v40, 0.0 }
 0x13f   : > { %v887_v48 = vpack.c.bf16 %v847_v43, %v843_v41  ;;  %v886_v49 = vpack.c.bf16 %v846_v44, %v842_v42 }
 0x140   : > { %v888_v50 = vpack.c.bf16 %v848_v47, %v844_v45 }
 0x141   : > { %975 = vmatprep.subr.bf16.mxu0 %v886_v49 }
 0x142   : > { %1048 = vmatprep.subr.bf16.mxu1 %v888_v50  ;;  %976 = vmatpush1.bf16.msra.mxu0 %v885_v46  ;;  %v920_v46 = vpop.permute.xlu0 %919  ;;  %v925_v50 = vpop.permute.xlu1 %924 }
 0x143   : > { %1049 = vmatpush1.bf16.msra.mxu1 %v887_v48 }
 0x145   : > { %994 = vmatmul.mubr.bf16.vlgmr.msra.gmra.mrb[32].mxu0 %v1655_v51 }
 0x146   : > { %1067 = vmatmul.mubr.bf16.vlgmr.msra.gmra.mrb[32].mxu1 %v1655_v51  ;;  %1003 = vmatprep.mubr.bf16.mxu0 %v1773_v9 }
 0x147   : > { %1076 = vmatprep.mubr.bf16.mxu1 %v1773_v9 }
 0x14d   : > { %1004 = vmatmul.mubr.bf16.gmra.mrb[36].mxu0 %v1656_v52 }
 0x14e   : > { %1077 = vmatmul.mubr.bf16.gmra.mrb[36].mxu1 %v1656_v52  ;;  %1013 = vmatprep.mubr.bf16.mxu0 %v1773_v9 }
 0x14f   : > { %1086 = vmatprep.mubr.bf16.mxu1 %v1773_v9 }
 0x155   : > { %1014 = vmatmul.mubr.bf16.gmra.mrb[40].mxu0 %v1657_v53 }
 0x156   : > { %1087 = vmatmul.mubr.bf16.gmra.mrb[40].mxu1 %v1657_v53  ;;  %1023 = vmatprep.mubr.bf16.mxu0 %v1773_v9 }
 0x157   : > { %1096 = vmatprep.mubr.bf16.mxu1 %v1773_v9 }
 0x15d   : > { %1024 = vmatmul.mubr.bf16.gmra.mrb[44].mxu0 %v1658_v54 }
 0x15e   : > { %1097 = vmatmul.mubr.bf16.gmra.mrb[44].mxu1 %v1658_v54  ;;  %1232 = vmatprep.mubr.bf16.mxu0 %v1773_v9 }
 0x15f   : > { %1285 = vmatprep.mubr.bf16.mxu1 %v1773_v9 }
 0x218   : > { %v995_v57 = vpop.f32.mrb[32].mxu0 }
 0x219   : > { %v996_v58 = vadd.f32 %v995_v57, %v900_v55  ;;  %v1068_v59 = vpop.f32.mrb[32].mxu1  ;;  %v997_v60 = vpop.f32.mrb[33].mxu0 }
 0x21a   : > { %v1069_v61 = vadd.f32 %v1068_v59, %v900_v55  ;;  %v998_v62 = vadd.f32 %v997_v60, %v900_v55  ;;  %v1070_v63 = vpop.f32.mrb[33].mxu1  ;;  %v999_v0 = vpop.f32.mrb[34].mxu0 }
 0x21b   : > { %v1071_v1 = vadd.f32 %v1070_v63, %v900_v55  ;;  %v1000_v2 = vadd.f32 %v999_v0, %v905_v56  ;;  %v1072_v3 = vpop.f32.mrb[34].mxu1  ;;  %v1001_v4 = vpop.f32.mrb[35].mxu0  ;;  %v1107_v8 = vmax.f32 %v996_v58, 0.0 }
 0x21c   : > { %v1073_v5 = vadd.f32 %v1072_v3, %v905_v56  ;;  %v1002_v6 = vadd.f32 %v1001_v4, %v905_v56  ;;  %v1074_v7 = vpop.f32.mrb[35].mxu1  ;;  %v1109_v12 = vmax.f32 %v1069_v61, 0.0  ;;  %v1108_v13 = vmax.f32 %v998_v62, 0.0 }
 0x21d   : > { %v1111_v10 = vmax.f32 %v1000_v2, 0.0  ;;  %v1075_v11 = vadd.f32 %v1074_v7, %v905_v56  ;;  %v1110_v17 = vmax.f32 %v1071_v1, 0.0 }
 0x21e   : > { %v1113_v14 = vmax.f32 %v1073_v5, 0.0  ;;  %v1112_v15 = vmax.f32 %v1002_v6, 0.0 }
 0x21f   : > { %v1143_v18 = vpack.c.bf16 %v1111_v10, %v1107_v8  ;;  %v1114_v19 = vmax.f32 %v1075_v11, 0.0 }
 0x220   : > { %v1145_v21 = vpack.c.bf16 %v1113_v14, %v1109_v12  ;;  %v1144_v22 = vpack.c.bf16 %v1112_v15, %v1108_v13  ;;  %v1005_v23 = vpop.f32.mrb[36].mxu0  ;;  %v930_v13 = vpop.permute.xlu0 %929 }
 0x221   : > { %v1146_v24 = vpack.c.bf16 %v1114_v19, %v1110_v17  ;;  %v1006_v25 = vadd.f32 %v1005_v23, %v910_v16  ;;  %v1078_v26 = vpop.f32.mrb[36].mxu1  ;;  %v1007_v27 = vpop.f32.mrb[37].mxu0 }
 0x222   : > { %v1079_v28 = vadd.f32 %v1078_v26, %v910_v16  ;;  %v1008_v29 = vadd.f32 %v1007_v27, %v910_v16  ;;  %v1080_v30 = vpop.f32.mrb[37].mxu1  ;;  %v1009_v31 = vpop.f32.mrb[38].mxu0  ;;  %1200 = vmatprep.subr.bf16.mxu0 %v1144_v22 }
 0x223   : > { %v1081_v32 = vadd.f32 %v1080_v30, %v910_v16  ;;  %v1010_v33 = vadd.f32 %v1009_v31, %v915_v20  ;;  %v1082_v34 = vpop.f32.mrb[38].mxu1  ;;  %1253 = vmatprep.subr.bf16.mxu1 %v1146_v24  ;;  %v1011_v35 = vpop.f32.mrb[39].mxu0  ;;  %1201 = vmatpush1.bf16.msra.mxu0 %v1143_v18  ;;  %v1115_v39 = vmax.f32 %v1006_v25, 0.0 }
 0x224   : > { %v1083_v36 = vadd.f32 %v1082_v34, %v915_v20  ;;  %v1012_v37 = vadd.f32 %v1011_v35, %v915_v20  ;;  %v1084_v38 = vpop.f32.mrb[39].mxu1  ;;  %1254 = vmatpush1.bf16.msra.mxu1 %v1145_v21  ;;  %v1117_v42 = vmax.f32 %v1079_v28, 0.0  ;;  %v1116_v43 = vmax.f32 %v1008_v29, 0.0  ;;  %v935_v17 = vpop.permute.xlu1 %934 }
 0x225   : > { %v1119_v40 = vmax.f32 %v1010_v33, 0.0  ;;  %v1085_v41 = vadd.f32 %v1084_v38, %v915_v20  ;;  %v1118_v47 = vmax.f32 %v1081_v32, 0.0 }
 0x226   : > { %v1121_v44 = vmax.f32 %v1083_v36, 0.0  ;;  %v1120_v45 = vmax.f32 %v1012_v37, 0.0 }
 0x227   : > { %v1147_v48 = vpack.c.bf16 %v1119_v40, %v1115_v39  ;;  %v1122_v49 = vmax.f32 %v1085_v41, 0.0 }
 0x228   : > { %v1149_v51 = vpack.c.bf16 %v1121_v44, %v1117_v42  ;;  %v1148_v52 = vpack.c.bf16 %v1120_v45, %v1116_v43  ;;  %v1015_v53 = vpop.f32.mrb[40].mxu0 }
 0x229   : > { %v1150_v54 = vpack.c.bf16 %v1122_v49, %v1118_v47  ;;  %v1016_v55 = vadd.f32 %v1015_v53, %v920_v46  ;;  %v1088_v56 = vpop.f32.mrb[40].mxu1  ;;  %v1017_v57 = vpop.f32.mrb[41].mxu0  ;;  %v1659_v49 = vld [vmem:[%s2130_s5] sm:$0xff]  }
 0x22a   : > { %v1089_v58 = vadd.f32 %v1088_v56, %v920_v46  ;;  %v1018_v59 = vadd.f32 %v1017_v57, %v920_v46  ;;  %v1090_v60 = vpop.f32.mrb[41].mxu1  ;;  %v1019_v61 = vpop.f32.mrb[42].mxu0  ;;  %1202 = vmatprep.subr.bf16.mxu0 %v1148_v52 }
 0x22b   : > { %v1091_v62 = vadd.f32 %v1090_v60, %v920_v46  ;;  %v1020_v63 = vadd.f32 %v1019_v61, %v925_v50  ;;  %v1092_v0 = vpop.f32.mrb[42].mxu1  ;;  %1255 = vmatprep.subr.bf16.mxu1 %v1150_v54  ;;  %v1021_v1 = vpop.f32.mrb[43].mxu0  ;;  %1203 = vmatpush1.bf16.msra.mxu0 %v1147_v48  ;;  %v1123_v5 = vmax.f32 %v1016_v55, 0.0 }
 0x22c   : > { %v1093_v2 = vadd.f32 %v1092_v0, %v925_v50  ;;  %v1022_v3 = vadd.f32 %v1021_v1, %v925_v50  ;;  %v1094_v4 = vpop.f32.mrb[43].mxu1  ;;  %1256 = vmatpush1.bf16.msra.mxu1 %v1149_v51  ;;  %v1125_v8 = vmax.f32 %v1089_v58, 0.0  ;;  %v1124_v10 = vmax.f32 %v1018_v59, 0.0  ;;  %v1166_v51 = vpop.permute.xlu0 %1165 }
 0x22d   : > { %v1127_v6 = vmax.f32 %v1020_v63, 0.0  ;;  %v1095_v7 = vadd.f32 %v1094_v4, %v925_v50  ;;  %v1126_v14 = vmax.f32 %v1091_v62, 0.0  ;;  %v1660_v50 = vld [vmem:[%s2130_s5 + $0x8] sm:$0xff]   ;;  %v1171_v52 = vpop.permute.xlu1 %1170 }
 0x22e   : > { %v1129_v11 = vmax.f32 %v1093_v2, 0.0  ;;  %v1128_v12 = vmax.f32 %v1022_v3, 0.0 }
 0x22f   : > { %v1151_v15 = vpack.c.bf16 %v1127_v6, %v1123_v5  ;;  %v1130_v16 = vmax.f32 %v1095_v7, 0.0 }
 0x230   : > { %v1153_v18 = vpack.c.bf16 %v1129_v11, %v1125_v8  ;;  %v1152_v19 = vpack.c.bf16 %v1128_v12, %v1124_v10  ;;  %v1025_v20 = vpop.f32.mrb[44].mxu0  ;;  %v1176_v4 = vpop.permute.xlu0 %1175 }
 0x231   : > { %v1154_v21 = vpack.c.bf16 %v1130_v16, %v1126_v14  ;;  %v1026_v22 = vadd.f32 %v1025_v20, %v930_v13  ;;  %v1098_v23 = vpop.f32.mrb[44].mxu1  ;;  %v1027_v24 = vpop.f32.mrb[45].mxu0 }
 0x232   : > { %v1099_v25 = vadd.f32 %v1098_v23, %v930_v13  ;;  %v1028_v26 = vadd.f32 %v1027_v24, %v930_v13  ;;  %v1100_v27 = vpop.f32.mrb[45].mxu1  ;;  %v1029_v28 = vpop.f32.mrb[46].mxu0  ;;  %1204 = vmatprep.subr.bf16.mxu0 %v1152_v19 }
 0x233   : > { %v1101_v29 = vadd.f32 %v1100_v27, %v930_v13  ;;  %v1030_v30 = vadd.f32 %v1029_v28, %v935_v17  ;;  %v1102_v31 = vpop.f32.mrb[46].mxu1  ;;  %1257 = vmatprep.subr.bf16.mxu1 %v1154_v21  ;;  %v1031_v32 = vpop.f32.mrb[47].mxu0  ;;  %1205 = vmatpush1.bf16.msra.mxu0 %v1151_v15  ;;  %v1131_v36 = vmax.f32 %v1026_v22, 0.0 }
 0x234   : > { %v1103_v33 = vadd.f32 %v1102_v31, %v935_v17  ;;  %v1032_v34 = vadd.f32 %v1031_v32, %v935_v17  ;;  %v1104_v35 = vpop.f32.mrb[47].mxu1  ;;  %1258 = vmatpush1.bf16.msra.mxu1 %v1153_v18  ;;  %v1133_v39 = vmax.f32 %v1099_v25, 0.0  ;;  %v1132_v40 = vmax.f32 %v1028_v26, 0.0  ;;  %v1181_v5 = vpop.permute.xlu1 %1180 }
 0x235   : > { %v1135_v37 = vmax.f32 %v1030_v30, 0.0  ;;  %v1105_v38 = vadd.f32 %v1104_v35, %v935_v17  ;;  %v1134_v43 = vmax.f32 %v1101_v29, 0.0  ;;  %v1329_v26 = vpop.permute.xlu0 %1328 }
 0x236   : > { %v1137_v41 = vmax.f32 %v1103_v33, 0.0  ;;  %v1136_v42 = vmax.f32 %v1032_v34, 0.0 }
 0x237   : > { %v1155_v44 = vpack.c.bf16 %v1135_v37, %v1131_v36  ;;  %v1138_v45 = vmax.f32 %v1105_v38, 0.0 }
 0x238   : > { %v1157_v46 = vpack.c.bf16 %v1137_v41, %v1133_v39  ;;  %v1156_v47 = vpack.c.bf16 %v1136_v42, %v1132_v40  ;;  %v1334_v29 = vpop.permute.xlu1 %1333 }
 0x239   : > { %v1158_v48 = vpack.c.bf16 %v1138_v45, %v1134_v43  ;;  %v1339_v41 = vpop.permute.xlu0 %1338 }
 0x23a   : > { %1206 = vmatprep.subr.bf16.mxu0 %v1156_v47 }
 0x23b   : > { %1259 = vmatprep.subr.bf16.mxu1 %v1158_v48  ;;  %1207 = vmatpush1.bf16.msra.mxu0 %v1155_v44 }
 0x23c   : > { %1260 = vmatpush1.bf16.msra.mxu1 %v1157_v46 }
 0x23e   : > { %1589 = vmatmul.mubr.msk.bf16.vlgmr.msra.gmra.mrb[48].mxu0 %vm1193_vm1, %v1659_v49 }
 0x23f   : > { %1591 = vmatmul.mubr.msk.bf16.vlgmr.msra.gmra.mrb[48].mxu1 %vm1193_vm1, %v1659_v49  ;;  %1242 = vmatprep.mubr.bf16.mxu0 %v1773_v9 }
 0x240   : > { %1295 = vmatprep.mubr.bf16.mxu1 %v1773_v9 }
 0x246   : > { %1590 = vmatmul.mubr.msk.bf16.gmra.mrb[52].mxu0 %vm1193_vm1, %v1660_v50 }
 0x247   : > { %1592 = vmatmul.mubr.msk.bf16.gmra.mrb[52].mxu1 %vm1193_vm1, %v1660_v50 }
 0x311   : > { %v1234_v53 = vpop.f32.mrb[48].mxu0 }
 0x312   : > { %v1235_v54 = vadd.f32 %v1234_v53, %v1166_v51  ;;  %v1287_v55 = vpop.f32.mrb[48].mxu1  ;;  %v1236_v56 = vpop.f32.mrb[49].mxu0 }
 0x313   : > { %v1288_v57 = vadd.f32 %v1287_v55, %v1166_v51  ;;  %v1237_v58 = vadd.f32 %v1236_v56, %v1166_v51  ;;  %v1289_v59 = vpop.f32.mrb[49].mxu1  ;;  %v1238_v60 = vpop.f32.mrb[50].mxu0 }
 0x314   : > { %1661 = vtanh.f32 %v1235_v54  ;;  %v1290_v61 = vadd.f32 %v1289_v59, %v1166_v51  ;;  %v1239_v62 = vadd.f32 %v1238_v60, %v1171_v52  ;;  %v1291_v9 = vpop.f32.mrb[50].mxu1  ;;  %v1240_v63 = vpop.f32.mrb[51].mxu0 }
 0x315   : > { %1663 = vtanh.f32 %v1288_v57  ;;  %v1292_v0 = vadd.f32 %v1291_v9, %v1171_v52  ;;  %v1293_v1 = vpop.f32.mrb[51].mxu1  ;;  %v1241_v2 = vadd.f32 %v1240_v63, %v1171_v52  ;;  %v1344_v55 = vpop.permute.xlu1 %1343 }
 0x316   : > { %1665 = vtanh.f32 %v1237_v58  ;;  %v1294_v3 = vadd.f32 %v1293_v1, %v1171_v52 }
 0x317   : > { %1667 = vtanh.f32 %v1290_v61 }
 0x318   : > { %1669 = vtanh.f32 %v1239_v62 }
 0x319   : > { %1671 = vtanh.f32 %v1292_v0  ;;  %v1244_v6 = vpop.f32.mrb[52].mxu0  ;;  %v1404_v0 = vlaneseq }
 0x31a   : > { %1673 = vtanh.f32 %v1241_v2  ;;  %v1245_v7 = vadd.f32 %v1244_v6, %v1176_v4  ;;  %v1297_v8 = vpop.f32.mrb[52].mxu1  ;;  %v1246_v10 = vpop.f32.mrb[53].mxu0 }
 0x31b   : > { %1675 = vtanh.f32 %v1294_v3  ;;  %v1298_v11 = vadd.f32 %v1297_v8, %v1176_v4  ;;  %v1247_v12 = vadd.f32 %v1246_v10, %v1176_v4  ;;  %v1299_v13 = vpop.f32.mrb[53].mxu1  ;;  %v1248_v14 = vpop.f32.mrb[54].mxu0  ;;  %v1405_v10 = vshrl.u32 %v1404_v0, 7 }
 0x31c   : > { %1677 = vtanh.f32 %v1245_v7  ;;  %v1300_v15 = vadd.f32 %v1299_v13, %v1176_v4  ;;  %v1249_v16 = vadd.f32 %v1248_v14, %v1181_v5  ;;  %v1301_v17 = vpop.f32.mrb[54].mxu1  ;;  %v1250_v18 = vpop.f32.mrb[55].mxu0  ;;  %vm1467_vm2 = vcmp.lt.s32.totalorder %v1404_v0, 512 }
 0x31d   : > { %1679 = vtanh.f32 %v1298_v11  ;;  %v1302_v19 = vadd.f32 %v1301_v17, %v1181_v5  ;;  %v1303_v20 = vpop.f32.mrb[55].mxu1  ;;  %v1251_v22 = vadd.f32 %v1250_v18, %v1181_v5 }
 0x31e   : > { %v1662_v21 = vpop.eup %1661  ;;  %1681 = vtanh.f32 %v1247_v12  ;;  %v1304_v24 = vadd.f32 %v1303_v20, %v1181_v5 }
 0x31f   : > { %v1664_v23 = vpop.eup %1663  ;;  %1683 = vtanh.f32 %v1300_v15  ;;  %v1346_v31 = vmul.f32 %v1662_v21, %v1329_v26 }
 0x320   : > { %v1666_v25 = vpop.eup %1665  ;;  %1685 = vtanh.f32 %v1249_v16  ;;  %v1348_v34 = vmul.f32 %v1664_v23, %v1329_v26 }
 0x321   : > { %v1668_v27 = vpop.eup %1667  ;;  %1687 = vtanh.f32 %v1302_v19  ;;  %v1347_v37 = vmul.f32 %v1666_v25, %v1329_v26  ;;  %v1406_v19 = vsub.s32 0, %v1405_v10 }
 0x322   : > { %v1670_v28 = vpop.eup %1669  ;;  %1689 = vtanh.f32 %v1251_v22  ;;  %v1349_v42 = vmul.f32 %v1668_v27, %v1329_v26  ;;  %v1402_v22 = vpop.permute.xlu0 %1401 }
 0x323   : > { %v1672_v30 = vpop.eup %1671  ;;  %v1350_v32 = vmul.f32 %v1670_v28, %v1334_v29  ;;  %1691 = vtanh.f32 %v1304_v24 }
 0x324   : > { %v1674_v33 = vpop.eup %1673  ;;  %v1352_v35 = vmul.f32 %v1672_v30, %v1334_v29 }
 0x325   : > { %v1676_v36 = vpop.eup %1675  ;;  %v1362_v38 = vadd.f32 %v1350_v32, %v1346_v31  ;;  %v1351_v39 = vmul.f32 %v1674_v33, %v1334_v29 }
 0x326   : > { %v1678_v40 = vpop.eup %1677  ;;  %v1380_v43 = vadd.f32 %v1352_v35, %v1348_v34  ;;  %v1353_v44 = vmul.f32 %v1676_v36, %v1334_v29  ;;  %v1407_v29 = vrot.slane %v1402_v22, %v1406_v19 }
 0x327   : > { %v1680_v45 = vpop.eup %1679  ;;  %v1371_v46 = vadd.f32 %v1351_v39, %v1347_v37  ;;  %v1354_v47 = vmul.f32 %v1678_v40, %v1339_v41 }
 0x328   : > { %v1682_v48 = vpop.eup %1681  ;;  %v1389_v49 = vadd.f32 %v1353_v44, %v1349_v42  ;;  %v1356_v50 = vmul.f32 %v1680_v45, %v1339_v41 }
 0x329   : > { %v1684_v51 = vpop.eup %1683  ;;  %v1363_v52 = vadd.f32 %v1362_v38, %v1354_v47  ;;  %v1355_v53 = vmul.f32 %v1682_v48, %v1339_v41 }
 0x32a   : > { %v1686_v54 = vpop.eup %1685  ;;  %v1381_v56 = vadd.f32 %v1380_v43, %v1356_v50  ;;  %v1357_v57 = vmul.f32 %v1684_v51, %v1339_v41 }
 0x32b   : > { %v1688_v58 = vpop.eup %1687  ;;  %v1372_v59 = vadd.f32 %v1371_v46, %v1355_v53  ;;  %v1358_v60 = vmul.f32 %v1686_v54, %v1344_v55 }
 0x32c   : > { %v1690_v61 = vpop.eup %1689  ;;  %v1390_v62 = vadd.f32 %v1389_v49, %v1357_v57  ;;  %v1360_v9 = vmul.f32 %v1688_v58, %v1344_v55 }
 0x32d   : > { %v1692_v63 = vpop.eup %1691  ;;  %v1364_v1 = vadd.f32 %v1363_v52, %v1358_v60  ;;  %v1359_v2 = vmul.f32 %v1690_v61, %v1344_v55  ;;  %v1774_v52 = vmov 1966171168  }
 0x32e   : > { %v1382_v3 = vadd.f32 %v1381_v56, %v1360_v9  ;;  %v1361_v4 = vmul.f32 %v1692_v63, %v1344_v55  ;;  %v1443_v53 = vunpack.c.l.s4 %v1774_v52 }
 0x32f   : > { %v1365_v5 = vrot.slane %v1364_v1, 4  ;;  %v1373_v6 = vadd.f32 %v1372_v59, %v1359_v2 }
 0x330   : > { %v1383_v7 = vrot.slane %v1382_v3, 4  ;;  %v1391_v8 = vadd.f32 %v1390_v62, %v1361_v4  ;;  %v1444_v54 = vunpack.c.0.s8 %v1443_v53 }
 0x331   : > { %v1366_v11 = vadd.f32 %v1365_v5, %v1364_v1  ;;  %v1374_v12 = vrot.slane %v1373_v6, 4 }
 0x332   : > { %v1384_v13 = vadd.f32 %v1383_v7, %v1382_v3  ;;  %v1392_v14 = vrot.slane %v1391_v8, 4  ;;  %v1447_v57 = vsub.s32 %v1444_v54, %v1405_v10 }
 0x333   : > { %v1367_v15 = vrot.slane %v1366_v11, 2  ;;  %v1375_v16 = vadd.f32 %v1374_v12, %v1373_v6 }
 0x334   : > { %v1385_v17 = vrot.slane %v1384_v13, 2  ;;  %v1393_v18 = vadd.f32 %v1392_v14, %v1391_v8 }
 0x335   : > { %v1368_v20 = vadd.f32 %v1367_v15, %v1366_v11  ;;  %v1376_v21 = vrot.slane %v1375_v16, 2 }
 0x336   : > { %v1386_v23 = vadd.f32 %v1385_v17, %v1384_v13  ;;  %v1394_v24 = vrot.slane %v1393_v18, 2 }
 0x337   : > { %v1369_v25 = vrot.slane %v1368_v20, 1  ;;  %v1377_v26 = vadd.f32 %v1376_v21, %v1375_v16 }
 0x338   : > { %v1387_v27 = vrot.slane %v1386_v23, 1  ;;  %v1395_v28 = vadd.f32 %v1394_v24, %v1393_v18 }
 0x339   : > { %v1370_v30 = vadd.f32 %v1369_v25, %v1368_v20  ;;  %v1378_v31 = vrot.slane %v1377_v26, 1 }
 0x33a   : > { %v1388_v32 = vadd.f32 %v1387_v27, %v1386_v23  ;;  %v1396_v33 = vrot.slane %v1395_v28, 1 }
 0x33b   : > { %v1408_v34 = vadd.f32 %v1407_v29, %v1370_v30  ;;  %v1379_v35 = vadd.f32 %v1378_v31, %v1377_v26 }
 0x33c   : > { %v1410_v36 = vadd.f32 %v1407_v29, %v1388_v32  ;;  %v1397_v37 = vadd.f32 %v1396_v33, %v1395_v28 }
 0x33d   : > { %v1593_v38 = vmul.f32 -1.442695, %v1408_v34  ;;  %v1409_v39 = vadd.f32 %v1407_v29, %v1379_v35 }
 0x33e   : > { %v1595_v40 = vmul.f32 -1.442695, %v1410_v36  ;;  %v1411_v41 = vadd.f32 %v1407_v29, %v1397_v37 }
 0x33f   : > { %1693 = vpow2.f32 %v1593_v38  ;;  %v1594_v42 = vmul.f32 -1.442695, %v1409_v39 }
 0x340   : > { %1695 = vpow2.f32 %v1595_v40  ;;  %v1596_v43 = vmul.f32 -1.442695, %v1411_v41 }
 0x341   : > { %1697 = vpow2.f32 %v1594_v42 }
 0x342   : > { %1699 = vpow2.f32 %v1596_v43 }
 0x349   : > { %v1694_v44 = vpop.eup %1693 }
 0x34a   : > { %v1696_v45 = vpop.eup %1695  ;;  %v1424_v46 = vadd.f32 1.0, %v1694_v44 }
 0x34b   : > { %v1698_v47 = vpop.eup %1697  ;;  %v1426_v48 = vadd.f32 1.0, %v1696_v45 }
 0x34c   : > { %v1700_v49 = vpop.eup %1699  ;;  %v1425_v50 = vadd.f32 1.0, %v1698_v47  ;;  %1701 = vrcp.f32 %v1424_v46 }
 0x34d   : > { %v1427_v51 = vadd.f32 1.0, %v1700_v49  ;;  %1703 = vrcp.f32 %v1426_v48 }
 0x34e   : > { %1705 = vrcp.f32 %v1425_v50 }
 0x34f   : > { %1707 = vrcp.f32 %v1427_v51 }
 0x356   : > { %v1702_v55 = vpop.eup %1701 }
 0x357   : > { %v1704_v56 = vpop.eup %1703 }
 0x358   : > { %v1706_v58 = vpop.eup %1705 }
 0x359   : > { %v1708_v59 = vpop.eup %1707  ;;  %v1440_v60 = vcombine.low %v1702_v55, %v1706_v58 }
 0x35a   : > { %v1441_v61 = vcombine.low %v1704_v56, %v1708_v59 }
 0x35b   : > { %v1448_v62 = vrot.slane %v1440_v60, %v1447_v57 }
 0x35c   : > { %v1455_v9 = vrot.slane %v1441_v61, %v1447_v57 }
 0x35e   : > { %v1456_v63 = vcombine.low %v1448_v62, %v1455_v9 }
 0x360   : > { %v1463_v1 = vrot.slane %v1456_v63, %v1447_v57 }
 0x362   : > { %1469 = vst.msk [vmem:[%s366_s30] sm:$0xf] %vm1467_vm2, %v1463_v1 }
 0x363   : > { %1722 = shalt.err (!%p1719_p5)
}
 0x364   : > { %s1723_s29 = scalar_lea.hbm %s2081_s18, 64  ;;  %s1727_s28 = scalar_lea.hbm %s2134_s9, 128 }
 0x365   : > { %p1724_p7 = scmp.ne.s32.totalorder %s2081_s18, %s1723_s29  ;;  %p1728_p12 = scmp.lt.u32.totalorder %s2081_s18, %s2134_s9 }
 0x366   : > { %p1729_p13 = scmp.lt.u32.totalorder %s1727_s28, %s1723_s29  ;;  %p1731_p1 = scmp.lt.u32.totalorder %s1723_s29, %s2081_s18 }
 0x367   : > { %p1725_p10 = pnand %p1724_p7, %p1867_p6 }
 0x368   : > { %p1730_p0 = por %p1729_p13, %p1728_p12 }
 0x369   : > { %p1726_p11 = pneg %p1725_p10 }
 0x36a   : > { %p1732_p2 = por %p1731_p1, %p1730_p0 }
 0x36c   : > { %p1733_p3 = pnand %p1732_p2, %p1726_p11 }
 0x36e   : > { %1736 = shalt.err (!%p1733_p3)
}
 0x36f   : > { %1604 = dma.vmem_to_hbm [thread:$0]  (%p1867_p6), %s2083_s10, 64, %s2081_s18, %s1471_s22  }
 0x370 PF: > { %s1497_s17 = sand.u32 1, %s1759_s11   ;;  %p1607_p4 = pnand %p1552_p9, %p1871_p8 }
 0x371   : > { %s1498_s23 = scalar_lea.sflag [#allocation5], %s1497_s17 }
 0x372   : > { %1754 = dma.done.wait (!%p1607_p4), %s1498_s23, 64  }
 0x373   : > { %1756 = vsyncadd (!%p1607_p4), %s1498_s23, 4294967232  ;;  %p21_p5 = scmp.ge.s32.totalorder %s1852_s16, 4   ;;  %s2137_s11 = smov %s1763_s12 }
 0x374   : > { %s2138_s12 = smov %s1767_s13  ;;  %s2139_s13 = smov %s1865_s19 }
 0x375   : > { %s2140_s14 = smov %s1852_s16  ;;  %23 = sbr.rel (!%p21_p5) target bundleno = 6 (0x6), region = 119 }
 0x37c   :  { %1503 = vsyncpa [#allocation5], 1 }
 0x37d   :  { %1505 = vsyncpa [#allocation5 + $0x1], 1 }

</bundles_post_ra>
